<compile_context>
chip_gen: v5e
topology: v5e:2x2
jax: 0.10.0
libtpu: 0.0.40
codegen_flags: <defaults>
</compile_context>

<pallas_src>
import functools
import math

import jax
import jax.numpy as jnp
from jax.experimental import pallas as pl
from jax.experimental.pallas import tpu as pltpu


def _round_up(x, m):
    return ((x + m - 1) // m) * m


_TM_MAX = 256                    # row-tile size (fits comfortably in v5e/v6e/v7x VMEM)
_VMEM_LIMIT = 32 * 1024 * 1024   # explicit scoped-VMEM budget, portable across gens


# ----------------------------- Pallas kernels ------------------------------ #

def _stats_kernel(p_ref, w_ref, g_ref, beta_ref, stats_ref, sum_sc, sq_sc, *,
                  eps, m_valid):
    """Pass 1: per-channel sum / sum-of-squares of the conv GEMM; finalize
    BatchNorm (batch statistics, biased variance) as a fused scale/shift."""
    i = pl.program_id(0)

    @pl.when(i == 0)
    def _():
        sum_sc[...] = jnp.zeros_like(sum_sc)
        sq_sc[...] = jnp.zeros_like(sq_sc)

    raw = jnp.dot(p_ref[...], w_ref[...], preferred_element_type=jnp.float32)
    # Zero-padded rows/columns of the patch matrix contribute exactly zero, so no
    # row masking is needed; divide by the true row count m_valid at the end.
    sum_sc[...] += jnp.sum(raw, axis=0, keepdims=True)
    sq_sc[...] += jnp.sum(raw * raw, axis=0, keepdims=True)

    @pl.when(i == pl.num_programs(0) - 1)
    def _():
        inv_m = 1.0 / m_valid
        mean = sum_sc[...] * inv_m
        var = jnp.maximum(sq_sc[...] * inv_m - mean * mean, 0.0)   # biased var
        scale = g_ref[...] * jax.lax.rsqrt(var + eps)              # EUP rsqrt
        shift = beta_ref[...] - mean * scale                       # conv bias cancels
        stats_ref[0:1, :] = scale
        stats_ref[1:2, :] = shift


def _apply_kernel(p_ref, w_ref, stats_ref, o_ref):
    """Pass 2: GEMM + fused BN scale/shift + ReLU, lane-dense (tm, 128) stores."""
    raw = jnp.dot(p_ref[...], w_ref[...], preferred_element_type=jnp.float32)
    o_ref[...] = jnp.maximum(raw * stats_ref[0:1, :] + stats_ref[1:2, :], 0.0)


# ------------------------------ fused wrapper ------------------------------ #

def _fused_conv_bn_relu(patches, w_mat, gamma, beta, eps):
    """patches: (M, K) im2col rows; w_mat: (K, Cout).  Returns (M, Cout) f32."""
    M, K = patches.shape
    Cout = w_mat.shape[1]

    tm = max(8, min(_TM_MAX, _round_up(M, 8)))
    m_pad = _round_up(M, tm)
    k_pad = _round_up(K, 8)        # sublane-aligned contraction dim
    c_pad = _round_up(Cout, 128)   # lane-dense output / full MXU columns
    nt = m_pad // tm

    p = jnp.zeros((m_pad, k_pad), jnp.float32).at[:M, :K].set(patches)
    w = jnp.zeros((k_pad, c_pad), jnp.float32).at[:K, :Cout].set(w_mat)
    g = jnp.zeros((1, c_pad), jnp.float32).at[:, :Cout].set(gamma.reshape(1, -1))
    b = jnp.zeros((1, c_pad), jnp.float32).at[:, :Cout].set(beta.reshape(1, -1))

    gemm_flops = 2 * m_pad * k_pad * c_pad
    p_bytes = m_pad * k_pad * 4
    w_bytes = k_pad * c_pad * 4
    o_bytes = m_pad * c_pad * 4

    # ---- Pass 1: batch statistics -> per-channel (scale, shift). ----
    stats = pl.pallas_call(
        functools.partial(_stats_kernel, eps=eps, m_valid=float(M)),
        out_shape=jax.ShapeDtypeStruct((2, c_pad), jnp.float32),
        grid_spec=pltpu.PrefetchScalarGridSpec(
            num_scalar_prefetch=0,
            grid=(nt,),
            in_specs=[
                pl.BlockSpec((tm, k_pad), lambda i: (i, 0)),      # patches tile
                pl.BlockSpec((k_pad, c_pad), lambda i: (0, 0)),   # weights resident
                pl.BlockSpec((1, c_pad), lambda i: (0, 0)),       # gamma resident
                pl.BlockSpec((1, c_pad), lambda i: (0, 0)),       # beta resident
            ],
            out_specs=pl.BlockSpec((2, c_pad), lambda i: (0, 0)),
            scratch_shapes=[pltpu.VMEM((1, c_pad), jnp.float32),
                            pltpu.VMEM((1, c_pad), jnp.float32)],
        ),
        compiler_params=pltpu.CompilerParams(
            dimension_semantics=("arbitrary",),
            vmem_limit_bytes=_VMEM_LIMIT),
        cost_estimate=pl.CostEstimate(
            flops=gemm_flops, transcendentals=c_pad,
            bytes_accessed=p_bytes + w_bytes + 5 * c_pad * 4),
    )(p, w, g, b)

    # ---- Pass 2: apply normalization + ReLU per row tile (embarrassingly parallel). ----
    out = pl.pallas_call(
        _apply_kernel,
        out_shape=jax.ShapeDtypeStruct((m_pad, c_pad), jnp.float32),
        grid_spec=pltpu.PrefetchScalarGridSpec(
            num_scalar_prefetch=0,
            grid=(nt,),
            in_specs=[
                pl.BlockSpec((tm, k_pad), lambda i: (i, 0)),      # patches tile
                pl.BlockSpec((k_pad, c_pad), lambda i: (0, 0)),   # weights resident
                pl.BlockSpec((2, c_pad), lambda i: (0, 0)),       # scale/shift resident
            ],
            out_specs=pl.BlockSpec((tm, c_pad), lambda i: (i, 0)),
        ),
        compiler_params=pltpu.CompilerParams(
            dimension_semantics=("parallel",),
            vmem_limit_bytes=_VMEM_LIMIT),
        cost_estimate=pl.CostEstimate(
            flops=gemm_flops, transcendentals=0,
            bytes_accessed=p_bytes + w_bytes + o_bytes),
    )(p, w, stats)

    return out[:M, :Cout]


# --------------------------- im2col glue (JAX) ------------------------------ #
# Patches are emitted directly in the final (rows, Cin*taps) layout (channels-
# last slicing + stack on the trailing axis), so no 5-D transpose is required.

def _im2col_2d(x, kh, kw, stride, padding, dilation):
    B, C, H, W = x.shape
    Ho = (H + 2 * padding - dilation * (kh - 1) - 1) // stride + 1
    Wo = (W + 2 * padding - dilation * (kw - 1) - 1) // stride + 1
    xp = jnp.pad(x.transpose(0, 2, 3, 1),                       # NHWC
                 ((0, 0), (padding, padding), (padding, padding), (0, 0)))
    taps = []
    for i in range(kh):
        for j in range(kw):
            h0, w0 = i * dilation, j * dilation
            taps.append(xp[:, h0:h0 + (Ho - 1) * stride + 1:stride,
                              w0:w0 + (Wo - 1) * stride + 1:stride, :])
    patches = jnp.stack(taps, axis=-1)                          # (B, Ho, Wo, C, kh*kw)
    return patches.reshape(B * Ho * Wo, C * kh * kw), Ho, Wo


def _im2col_1d(x, k, stride, padding, dilation):
    B, C, L = x.shape
    Lo = (L + 2 * padding - dilation * (k - 1) - 1) // stride + 1
    xp = jnp.pad(x.transpose(0, 2, 1), ((0, 0), (padding, padding), (0, 0)))  # NLC
    taps = []
    for i in range(k):
        l0 = i * dilation
        taps.append(xp[:, l0:l0 + (Lo - 1) * stride + 1:stride, :])
    patches = jnp.stack(taps, axis=-1)                          # (B, Lo, C, k)
    return patches.reshape(B * Lo, C * k), Lo


# ------------------------------- CNA module --------------------------------- #

class CNAPallas:
    """Pallas port of the PyTorch CNA module (Conv{1,2}d + BatchNorm + ReLU)."""

    def __init__(self, in_channels, out_channels, kernel_size, stride, padding,
                 dilation, key, eps=1e-5):
        self.cin, self.cout = in_channels, out_channels
        self.k, self.s, self.p, self.d = kernel_size, stride, padding, dilation
        self.eps = eps
        k2, k1, kb2, kb1 = jax.random.split(key, 4)
        # Deterministic init mimicking PyTorch's U(-1/sqrt(fan_in), 1/sqrt(fan_in)).
        fan2 = in_channels * kernel_size * kernel_size
        fan1 = in_channels * kernel_size
        b2, b1 = 1.0 / math.sqrt(fan2), 1.0 / math.sqrt(fan1)
        self.w2 = jax.random.uniform(k2, (out_channels, in_channels, kernel_size, kernel_size),
                                     jnp.float32, -b2, b2)
        self.bias2 = jax.random.uniform(kb2, (out_channels,), jnp.float32, -b2, b2)
        self.w1 = jax.random.uniform(k1, (out_channels, in_channels, kernel_size),
                                     jnp.float32, -b1, b1)
        self.bias1 = jax.random.uniform(kb1, (out_channels,), jnp.float32, -b1, b1)
        # BatchNorm affine params (PyTorch defaults).
        self.gamma = jnp.ones((out_channels,), jnp.float32)
        self.beta = jnp.zeros((out_channels,), jnp.float32)
        # Note: the conv biases (bias1/bias2) cancel exactly under train-mode BN
        # and are therefore not passed to the fused kernel (the reference still
        # applies them — the outputs are mathematically identical).

    def __call__(self, x):
        if x.ndim == 3:                                    # Conv1d path (NCL)
            B = x.shape[0]
            patches, Lo = _im2col_1d(x, self.k, self.s, self.p, self.d)
            w_mat = self.w1.reshape(self.cout, -1).T       # (Cin*k, Cout)
            out = _fused_conv_bn_relu(patches, w_mat, self.gamma, self.beta, self.eps)
            # TODO(synk): final transpose kept only for PyTorch NCL layout parity.
            return out.reshape(B, Lo, self.cout).transpose(0, 2, 1)
        else:                                              # Conv2d path (NCHW)
            B = x.shape[0]
            patches, Ho, Wo = _im2col_2d(x, self.k, self.k, self.s, self.p, self.d)
            w_mat = self.w2.reshape(self.cout, -1).T       # (Cin*k*k, Cout)
            out = _fused_conv_bn_relu(patches, w_mat, self.gamma, self.beta, self.eps)
            # TODO(synk): final transpose kept only for PyTorch NCHW layout parity.
            return out.reshape(B, Ho, Wo, self.cout).transpose(0, 3, 1, 2)


# ------------------------------- reference ---------------------------------- #

def _reference(x, w, bias, gamma, beta, eps, stride, padding, dilation):
    if x.ndim == 4:
        y = jax.lax.conv_general_dilated(
            x, w, (stride, stride), [(padding, padding)] * 2,
            rhs_dilation=(dilation, dilation),
            dimension_numbers=("NCHW", "OIHW", "NCHW"))
        axes = (0, 2, 3)
    else:
        y = jax.lax.conv_general_dilated(
            x, w, (stride,), [(padding, padding)],
            rhs_dilation=(dilation,),
            dimension_numbers=("NCH", "OIH", "NCH"))
        axes = (0, 2)
    bshape = (1, -1) + (1,) * (y.ndim - 2)
    y = y + bias.reshape(bshape)
    mean = y.mean(axes, keepdims=True)
    var = ((y - mean) ** 2).mean(axes, keepdims=True)
    y = (y - mean) / jnp.sqrt(var + eps)
    y = y * gamma.reshape(bshape) + beta.reshape(bshape)
    return jnp.maximum(y, 0.0)


# --------------------------------- main -------------------------------------- #

if __name__ == "__main__":
    key = jax.random.PRNGKey(0)
    kmod, kx2, kx1 = jax.random.split(key, 3)

    in_channels, out_channels = 4, 8
    kernel_size, stride, padding, dilation = 3, 1, 1, 1
    mod = CNAPallas(in_channels, out_channels, kernel_size, stride, padding,
                    dilation, kmod)

    x2d = jax.random.normal(kx2, (2, in_channels, 16, 16), jnp.float32)   # NCHW
    x1d = jax.random.normal(kx1, (2, in_channels, 16), jnp.float32)       # NCL

    y2d = jax.block_until_ready(mod(x2d))
    y1d = jax.block_until_ready(mod(x1d))

    ref2d = _reference(x2d, mod.w2, mod.bias2, mod.gamma, mod.beta, mod.eps,
                       stride, padding, dilation)
    ref1d = _reference(x1d, mod.w1, mod.bias1, mod.gamma, mod.beta, mod.eps,
                       stride, padding, dilation)

    assert y2d.shape == (2, out_channels, 16, 16) and y2d.dtype == jnp.float32
    assert y1d.shape == (2, out_channels, 16) and y1d.dtype == jnp.float32
    assert jnp.allclose(y2d, ref2d, atol=1e-2, rtol=1e-2)
    assert jnp.allclose(y1d, ref1d, atol=1e-2, rtol=1e-2)

    print("KERNEL_OK")
</pallas_src>

<mosaic_0001>
module attributes {stable_mosaic.version = 11 : i64} {
  func.func @_stats_kernel(%arg0: i32, %arg1: memref<256x40xf32, #tpu.memory_space<vmem>>, %arg2: memref<40x128xf32, #tpu.memory_space<vmem>>, %arg3: memref<1x128xf32, #tpu.memory_space<vmem>>, %arg4: memref<1x128xf32, #tpu.memory_space<vmem>>, %arg5: memref<2x128xf32, #tpu.memory_space<vmem>>, %arg6: memref<1x128xf32, #tpu.memory_space<vmem>>, %arg7: memref<1x128xf32, #tpu.memory_space<vmem>>) attributes {dimension_semantics = [#tpu.dimension_semantics<arbitrary>], iteration_bounds = array<i64: 2>, scalar_prefetch = 0 : i64, scratch_operands = 2 : i64, tpu.core_type = #tpu.core_type<tc>, window_params = [{transform_indices = @transform_0, window_bounds = array<i64: 256, 40>}, {pipeline_mode = #tpu.pipeline_mode<synchronous>, transform_indices = @transform_1, window_bounds = array<i64: 40, 128>}, {pipeline_mode = #tpu.pipeline_mode<synchronous>, transform_indices = @transform_2, window_bounds = array<i64: 1, 128>}, {pipeline_mode = #tpu.pipeline_mode<synchronous>, transform_indices = @transform_3, window_bounds = array<i64: 1, 128>}, {pipeline_mode = #tpu.pipeline_mode<synchronous>, transform_indices = @transform_4, window_bounds = array<i64: 2, 128>}]} {
    %c0_i32 = arith.constant 0 : i32
    %0 = arith.cmpi eq, %arg0, %c0_i32 : i32
    %1 = arith.extui %0 : i1 to i32
    %c0_i32_0 = arith.constant 0 : i32
    %2 = arith.cmpi ne, %1, %c0_i32_0 : i32
    scf.if %2 {
      %cst_15 = arith.constant 0.000000e+00 : f32
      %20 = vector.broadcast %cst_15 : f32 to vector<1x128xf32>
      %c0_16 = arith.constant 0 : index
      %c0_17 = arith.constant 0 : index
      %21 = vector.load %arg6[%c0_16, %c0_17] : memref<1x128xf32, #tpu.memory_space<vmem>>, vector<1x128xf32>
      tpu.vector_store %arg6[%c0_16, %c0_17], %20 {strides = array<i32>} : memref<1x128xf32, #tpu.memory_space<vmem>>, vector<1x128xf32>,
      %cst_18 = arith.constant 0.000000e+00 : f32
      %22 = vector.broadcast %cst_18 : f32 to vector<1x128xf32>
      %c0_19 = arith.constant 0 : index
      %c0_20 = arith.constant 0 : index
      %23 = vector.load %arg7[%c0_19, %c0_20] : memref<1x128xf32, #tpu.memory_space<vmem>>, vector<1x128xf32>
      tpu.vector_store %arg7[%c0_19, %c0_20], %22 {strides = array<i32>} : memref<1x128xf32, #tpu.memory_space<vmem>>, vector<1x128xf32>,
    } else {
    }
    %c0 = arith.constant 0 : index
    %c0_1 = arith.constant 0 : index
    %3 = vector.load %arg1[%c0, %c0_1] : memref<256x40xf32, #tpu.memory_space<vmem>>, vector<256x40xf32>
    %c0_2 = arith.constant 0 : index
    %c0_3 = arith.constant 0 : index
    %4 = vector.load %arg2[%c0_2, %c0_3] : memref<40x128xf32, #tpu.memory_space<vmem>>, vector<40x128xf32>
    %cst = arith.constant dense<0.000000e+00> : vector<256x128xf32>
    %5 = tpu.matmul %3, %4, %cst {dimension_numbers = #tpu.dot_dimension_numbers<[1], [0], [0], [1], [0, 0, 1, 1], [], []>} : vector<256x40xf32>, vector<40x128xf32>, vector<256x128xf32> -> vector<256x128xf32>
    %c0_4 = arith.constant 0 : index
    %c0_5 = arith.constant 0 : index
    %6 = vector.load %arg6[%c0_4, %c0_5] : memref<1x128xf32, #tpu.memory_space<vmem>>, vector<1x128xf32>
    %cst_6 = arith.constant dense<0.000000e+00> : vector<128xf32>
    %7 = vector.multi_reduction <add>, %5, %cst_6 [0] : vector<256x128xf32> to vector<128xf32>
    %8 = vector.shape_cast %7 : vector<128xf32> to vector<1x128xf32>
    %9 = arith.addf %6, %8 : vector<1x128xf32>
    %c0_7 = arith.constant 0 : index
    %c0_8 = arith.constant 0 : index
    %10 = vector.load %arg6[%c0_7, %c0_8] : memref<1x128xf32, #tpu.memory_space<vmem>>, vector<1x128xf32>
    tpu.vector_store %arg6[%c0_7, %c0_8], %9 {strides = array<i32>} : memref<1x128xf32, #tpu.memory_space<vmem>>, vector<1x128xf32>,
    %c0_9 = arith.constant 0 : index
    %c0_10 = arith.constant 0 : index
    %11 = vector.load %arg7[%c0_9, %c0_10] : memref<1x128xf32, #tpu.memory_space<vmem>>, vector<1x128xf32>
    %12 = arith.mulf %5, %5 : vector<256x128xf32>
    %cst_11 = arith.constant dense<0.000000e+00> : vector<128xf32>
    %13 = vector.multi_reduction <add>, %12, %cst_11 [0] : vector<256x128xf32> to vector<128xf32>
    %14 = vector.shape_cast %13 : vector<128xf32> to vector<1x128xf32>
    %15 = arith.addf %11, %14 : vector<1x128xf32>
    %c0_12 = arith.constant 0 : index
    %c0_13 = arith.constant 0 : index
    %16 = vector.load %arg7[%c0_12, %c0_13] : memref<1x128xf32, #tpu.memory_space<vmem>>, vector<1x128xf32>
    tpu.vector_store %arg7[%c0_12, %c0_13], %15 {strides = array<i32>} : memref<1x128xf32, #tpu.memory_space<vmem>>, vector<1x128xf32>,
    %c1_i32 = arith.constant 1 : i32
    %17 = arith.cmpi eq, %arg0, %c1_i32 : i32
    %18 = arith.extui %17 : i1 to i32
    %c0_i32_14 = arith.constant 0 : i32
    %19 = arith.cmpi ne, %18, %c0_i32_14 : i32
    scf.if %19 {
      %c0_15 = arith.constant 0 : index
      %c0_16 = arith.constant 0 : index
      %20 = vector.load %arg6[%c0_15, %c0_16] : memref<1x128xf32, #tpu.memory_space<vmem>>, vector<1x128xf32>
      %cst_17 = arith.constant 0.001953125 : f32
      %21 = vector.broadcast %cst_17 : f32 to vector<1x128xf32>
      %22 = arith.mulf %20, %21 : vector<1x128xf32>
      %c0_18 = arith.constant 0 : index
      %c0_19 = arith.constant 0 : index
      %23 = vector.load %arg7[%c0_18, %c0_19] : memref<1x128xf32, #tpu.memory_space<vmem>>, vector<1x128xf32>
      %cst_20 = arith.constant 0.001953125 : f32
      %24 = vector.broadcast %cst_20 : f32 to vector<1x128xf32>
      %25 = arith.mulf %23, %24 : vector<1x128xf32>
      %26 = arith.mulf %22, %22 : vector<1x128xf32>
      %27 = arith.subf %25, %26 : vector<1x128xf32>
      %cst_21 = arith.constant 0.000000e+00 : f32
      %28 = vector.broadcast %cst_21 : f32 to vector<1x128xf32>
      %29 = arith.maximumf %27, %28 : vector<1x128xf32>
      %c0_22 = arith.constant 0 : index
      %c0_23 = arith.constant 0 : index
      %30 = vector.load %arg3[%c0_22, %c0_23] : memref<1x128xf32, #tpu.memory_space<vmem>>, vector<1x128xf32>
      %cst_24 = arith.constant 9.99999974E-6 : f32
      %31 = vector.broadcast %cst_24 : f32 to vector<1x128xf32>
      %32 = arith.addf %29, %31 : vector<1x128xf32>
      %33 = math.rsqrt %32 : vector<1x128xf32>
      %34 = arith.mulf %30, %33 : vector<1x128xf32>
      %c0_25 = arith.constant 0 : index
      %c0_26 = arith.constant 0 : index
      %35 = vector.load %arg4[%c0_25, %c0_26] : memref<1x128xf32, #tpu.memory_space<vmem>>, vector<1x128xf32>
      %36 = arith.mulf %22, %34 : vector<1x128xf32>
      %37 = arith.subf %35, %36 : vector<1x128xf32>
      %c0_27 = arith.constant 0 : index
      %c0_28 = arith.constant 0 : index
      %38 = vector.load %arg5[%c0_27, %c0_28] : memref<2x128xf32, #tpu.memory_space<vmem>>, vector<1x128xf32>
      tpu.vector_store %arg5[%c0_27, %c0_28], %34 {strides = array<i32>} : memref<2x128xf32, #tpu.memory_space<vmem>>, vector<1x128xf32>,
      %c1 = arith.constant 1 : index
      %c0_29 = arith.constant 0 : index
      %39 = vector.load %arg5[%c1, %c0_29] : memref<2x128xf32, #tpu.memory_space<vmem>>, vector<1x128xf32>
      tpu.vector_store %arg5[%c1, %c0_29], %37 {strides = array<i32>} : memref<2x128xf32, #tpu.memory_space<vmem>>, vector<1x128xf32>,
    } else {
    }
    return
  }
  func.func @transform_0(%arg0: i32) -> (i32, i32) {
    %c0_i32 = arith.constant 0 : i32
    %c0_i32_0 = arith.constant 0 : i32
    return %arg0, %c0_i32 : i32, i32
  }
  func.func @transform_1(%arg0: i32) -> (i32, i32) {
    %c0_i32 = arith.constant 0 : i32
    %c0_i32_0 = arith.constant 0 : i32
    %c0_i32_1 = arith.constant 0 : i32
    return %c0_i32, %c0_i32_0 : i32, i32
  }
  func.func @transform_2(%arg0: i32) -> (i32, i32) {
    %c0_i32 = arith.constant 0 : i32
    %c0_i32_0 = arith.constant 0 : i32
    %c0_i32_1 = arith.constant 0 : i32
    return %c0_i32, %c0_i32_0 : i32, i32
  }
  func.func @transform_3(%arg0: i32) -> (i32, i32) {
    %c0_i32 = arith.constant 0 : i32
    %c0_i32_0 = arith.constant 0 : i32
    %c0_i32_1 = arith.constant 0 : i32
    return %c0_i32, %c0_i32_0 : i32, i32
  }
  func.func @transform_4(%arg0: i32) -> (i32, i32) {
    %c0_i32 = arith.constant 0 : i32
    %c0_i32_0 = arith.constant 0 : i32
    %c0_i32_1 = arith.constant 0 : i32
    return %c0_i32, %c0_i32_0 : i32, i32
  }
}

</mosaic_0001>

<bundles_post_ra>
// kernel: tpu_custom_call.1
= control target key start
LH: loop header
LB: loop body
LE: loop exit
PB: predicated region body
PF: predicated region fallthrough
CT: control target
= control target key end

     0   :  { %9 = vsyncpa [#allocation5], 0  ;;  %s772_s15 = smov 0   ;;  %s922_s0 = inlined_call_operand.vmem [shape: f32[512,40], index: 0, kind: input, shape index: {}]   ;;  %s923_s1 = inlined_call_operand.vmem [shape: f32[40,128], index: 1, kind: input, shape index: {}]   ;;  %s924_s2 = inlined_call_operand.vmem [shape: f32[1,128], index: 2, kind: input, shape index: {}]   ;;  %s925_s3 = inlined_call_operand.vmem [shape: f32[1,128], index: 3, kind: input, shape index: {}]   ;;  %s926_s4 = inlined_call_operand.hbm [shape: f32[2,128], index: 4, kind: output, shape index: {}]  }
   0x1 LB: > { %s778_s16 = sadd.s32 4294967295, %s743_s15   ;;  %p631_p0 = scmp.ge.s32.totalorder %s743_s15, 1  ;;  %s743_s15 = sphi %s772_s15, %s15_s15  }
   0x2   : > { %p159_p1 = scmp.lt.s32.totalorder %s743_s15, 3 }
   0x4   : > { %p160_p2 = pnand %p631_p0, %p159_p1 }
   0x5   : > { %s632_s17 = sshll.u32 (!%p160_p2), %s778_s16, 5  ;;  %p634_p4 = scmp.ne.s32.totalorder (!%p160_p2), %s778_s16, 0 }
   0x6   : > { %163 = sbr.rel (%p160_p2) target bundleno = 323 (0x143), region = 36  ;;  %p181_p3 = scmp.lt.s32.totalorder (!%p160_p2), %s632_s17, 63 }
   0xb   : > { %s928_s17 = smov (!%p181_p3, %s632_s17), 63  ;;  %189 = sbr.rel (%p634_p4) target bundleno = 19 (0x13), region = 40 }
   0xc   : > { %s633_s18 = sshll.u32 %s928_s17, 3 }
   0xd   : > { %s786_s21 = scalar_lea.vmem %s922_s0, %s633_s18 }
  0x10   : > { %v745_v0 = vmov 0.0  }
  0x11   : > { %190 = vst [vmem:[#allocation2] sm:$0x1] %v745_v0 }
  0x12   : > { %191 = vst [vmem:[#allocation3] sm:$0x1] %v745_v0 }
  0x13 PF: > { %v228_v1 = vld [vmem:[%s923_s1 + $0x20] sm:$0xff]  ;;  %v227_v2 = vld [vmem:[%s923_s1 + $0x18] sm:$0xff]  ;;  %v226_v3 = vld [vmem:[%s923_s1 + $0x10] sm:$0xff]  ;;  %vm229_vm0 = vcmask 326656   ;;  %p667_p5 = scmp.ne.s32.totalorder %s778_s16, 1 }
  0x14   : > { %337 = vmatpush.msra.mxu0 %v228_v1  ;;  %672 = vmatpush.msra.mxu1 %v228_v1  ;;  %v225_v4 = vld [vmem:[%s923_s1 + $0x8] sm:$0xff]  ;;  %v224_v5 = vld [vmem:[%s923_s1] sm:$0xff]  ;;  %v194_v13 = vld [vmem:[%s786_s21 + $0x10] sm:$0xff] }
  0x15   : > { %673 = vmatpush.msra.mxu2 %v228_v1  ;;  %674 = vmatpush.msra.mxu3 %v228_v1  ;;  %v192_v6 = vld [vmem:[%s786_s21] sm:$0xff]  ;;  %v193_v9 = vld [vmem:[%s786_s21 + $0x8] sm:$0xff]  ;;  %v202_v14 = vld [vmem:[%s786_s21 + $0x50] sm:$0xff] }
  0x16   : > { %338 = vmatpush.msra.mxu0 %v227_v2  ;;  %675 = vmatpush.msra.mxu1 %v227_v2  ;;  %v200_v7 = vld [vmem:[%s786_s21 + $0x40] sm:$0xff]  ;;  %v201_v10 = vld [vmem:[%s786_s21 + $0x48] sm:$0xff]  ;;  %v210_v15 = vld [vmem:[%s786_s21 + $0x90] sm:$0xff] }
  0x17   : > { %676 = vmatpush.msra.mxu2 %v227_v2  ;;  %677 = vmatpush.msra.mxu3 %v227_v2  ;;  %v208_v8 = vld [vmem:[%s786_s21 + $0x80] sm:$0xff]  ;;  %v209_v11 = vld [vmem:[%s786_s21 + $0x88] sm:$0xff]  ;;  %v195_v17 = vld [vmem:[%s786_s21 + $0x18] sm:$0xff] }
  0x18   : > { %339 = vmatpush.msra.mxu0 %v226_v3  ;;  %678 = vmatpush.msra.mxu1 %v226_v3  ;;  %v216_v12 = vld [vmem:[%s786_s21 + $0xc0] sm:$0xff]  ;;  %v217_v16 = vld [vmem:[%s786_s21 + $0xc8] sm:$0xff]  ;;  %v203_v18 = vld [vmem:[%s786_s21 + $0x58] sm:$0xff] }
  0x19   : > { %679 = vmatpush.msra.mxu2 %v226_v3  ;;  %680 = vmatpush.msra.mxu3 %v226_v3  ;;  %v211_v19 = vld [vmem:[%s786_s21 + $0x98] sm:$0xff]  ;;  %v218_v20 = vld [vmem:[%s786_s21 + $0xd0] sm:$0xff]  ;;  %v196_v21 = vld [vmem:[%s786_s21 + $0x20] sm:$0xff] }
  0x1a   : > { %340 = vmatpush.msra.mxu0 %v225_v4  ;;  %681 = vmatpush.msra.mxu1 %v225_v4  ;;  %v204_v22 = vld [vmem:[%s786_s21 + $0x60] sm:$0xff]  ;;  %v219_v23 = vld [vmem:[%s786_s21 + $0xd8] sm:$0xff]  ;;  %v197_v25 = vld [vmem:[%s786_s21 + $0x28] sm:$0xff] }
  0x1b   : > { %682 = vmatpush.msra.mxu2 %v225_v4  ;;  %683 = vmatpush.msra.mxu3 %v225_v4  ;;  %v212_v24 = vld [vmem:[%s786_s21 + $0xa0] sm:$0xff]  ;;  %v205_v26 = vld [vmem:[%s786_s21 + $0x68] sm:$0xff]  ;;  %v198_v29 = vld [vmem:[%s786_s21 + $0x30] sm:$0xff] }
  0x1c   : > { %341 = vmatpush.msra.mxu0 %v224_v5  ;;  %684 = vmatpush.msra.mxu1 %v224_v5  ;;  %v220_v27 = vld [vmem:[%s786_s21 + $0xe0] sm:$0xff]  ;;  %v213_v28 = vld [vmem:[%s786_s21 + $0xa8] sm:$0xff]  ;;  %v206_v30 = vld [vmem:[%s786_s21 + $0x70] sm:$0xff] }
  0x1d   : > { %635 = vmatmul.msk.f32.vlgmr.msra.gmra.mxu0 %vm229_vm0, %v192_v6  ;;  %643 = vmatmul.msk.f32.vlgmr.msra.gmra.mxu1 %vm229_vm0, %v200_v7  ;;  %v221_v31 = vld [vmem:[%s786_s21 + $0xe8] sm:$0xff]  ;;  %v214_v32 = vld [vmem:[%s786_s21 + $0xb0] sm:$0xff]  ;;  %v199_v33 = vld [vmem:[%s786_s21 + $0x38] sm:$0xff] }
  0x1e   : > { %685 = vmatpush.msra.mxu2 %v224_v5  ;;  %686 = vmatpush.msra.mxu3 %v224_v5  ;;  %v207_v34 = vld [vmem:[%s786_s21 + $0x78] sm:$0xff]  ;;  %v222_v35 = vld [vmem:[%s786_s21 + $0xf0] sm:$0xff] }
  0x1f   : > { %651 = vmatmul.msk.f32.vlgmr.msra.gmra.mxu2 %vm229_vm0, %v208_v8  ;;  %659 = vmatmul.msk.f32.vlgmr.msra.gmra.mxu3 %vm229_vm0, %v216_v12  ;;  %v215_v36 = vld [vmem:[%s786_s21 + $0xb8] sm:$0xff] }
  0x20   : > { %v223_v37 = vld [vmem:[%s786_s21 + $0xf8] sm:$0xff] }
  0x25   : > { %636 = vmatmul.msk.f32.gmra.mxu0 %vm229_vm0, %v193_v9  ;;  %644 = vmatmul.msk.f32.gmra.mxu1 %vm229_vm0, %v201_v10 }
  0x27   : > { %652 = vmatmul.msk.f32.gmra.mxu2 %vm229_vm0, %v209_v11  ;;  %660 = vmatmul.msk.f32.gmra.mxu3 %vm229_vm0, %v217_v16 }
  0x2d   : > { %637 = vmatmul.msk.f32.gmra.mxu0 %vm229_vm0, %v194_v13  ;;  %645 = vmatmul.msk.f32.gmra.mxu1 %vm229_vm0, %v202_v14 }
  0x2f   : > { %653 = vmatmul.msk.f32.gmra.mxu2 %vm229_vm0, %v210_v15  ;;  %661 = vmatmul.msk.f32.gmra.mxu3 %vm229_vm0, %v218_v20 }
  0x35   : > { %638 = vmatmul.msk.f32.gmra.mxu0 %vm229_vm0, %v195_v17  ;;  %646 = vmatmul.msk.f32.gmra.mxu1 %vm229_vm0, %v203_v18 }
  0x37   : > { %654 = vmatmul.msk.f32.gmra.mxu2 %vm229_vm0, %v211_v19  ;;  %662 = vmatmul.msk.f32.gmra.mxu3 %vm229_vm0, %v219_v23 }
  0x3d   : > { %639 = vmatmul.msk.f32.gmra.mxu0 %vm229_vm0, %v196_v21  ;;  %647 = vmatmul.msk.f32.gmra.mxu1 %vm229_vm0, %v204_v22 }
  0x3f   : > { %655 = vmatmul.msk.f32.gmra.mxu2 %vm229_vm0, %v212_v24  ;;  %663 = vmatmul.msk.f32.gmra.mxu3 %vm229_vm0, %v220_v27 }
  0x45   : > { %640 = vmatmul.msk.f32.gmra.mxu0 %vm229_vm0, %v197_v25  ;;  %648 = vmatmul.msk.f32.gmra.mxu1 %vm229_vm0, %v205_v26 }
  0x47   : > { %656 = vmatmul.msk.f32.gmra.mxu2 %vm229_vm0, %v213_v28  ;;  %664 = vmatmul.msk.f32.gmra.mxu3 %vm229_vm0, %v221_v31 }
  0x4d   : > { %641 = vmatmul.msk.f32.gmra.mxu0 %vm229_vm0, %v198_v29  ;;  %649 = vmatmul.msk.f32.gmra.mxu1 %vm229_vm0, %v206_v30 }
  0x4f   : > { %657 = vmatmul.msk.f32.gmra.mxu2 %vm229_vm0, %v214_v32  ;;  %665 = vmatmul.msk.f32.gmra.mxu3 %vm229_vm0, %v222_v35 }
  0x55   : > { %642 = vmatmul.msk.f32.gmra.mxu0 %vm229_vm0, %v199_v33  ;;  %650 = vmatmul.msk.f32.gmra.mxu1 %vm229_vm0, %v207_v34 }
  0x57   : > { %658 = vmatmul.msk.f32.gmra.mxu2 %vm229_vm0, %v215_v36  ;;  %666 = vmatmul.msk.f32.gmra.mxu3 %vm229_vm0, %v223_v37 }
  0x9a   : > { %v343_v38 = vpop.f32.mrf.mxu0  ;;  %v367_v39 = vpop.f32.mrf.mxu1 }
  0x9b   : > { %v480_v56 = vmul.f32 %v343_v38, %v343_v38  ;;  %v488_v18 = vmul.f32 %v367_v39, %v367_v39 }
  0xa2   : > { %v346_v40 = vpop.f32.mrf.mxu0  ;;  %v370_v41 = vpop.f32.mrf.mxu1 }
  0xa3   : > { %v868_v42 = vpop.f32.mrf.mxu2  ;;  %v872_v48 = vpop.f32.mrf.mxu3  ;;  %v481_v54 = vmul.f32 %v346_v40, %v346_v40  ;;  %v440_v57 = vadd.f32 %v346_v40, %v343_v38  ;;  %v489_v22 = vmul.f32 %v370_v41, %v370_v41 }
  0xa5   : > { %v512_v59 = vadd.f32 %v481_v54, %v480_v56  ;;  %v496_v54 = vmul.f32 %v868_v42, %v868_v42 }
  0xaa   : > { %v349_v43 = vpop.f32.mrf.mxu0  ;;  %v373_v44 = vpop.f32.mrf.mxu1 }
  0xab   : > { %v870_v46 = vpop.f32.mrf.mxu2  ;;  %v876_v53 = vpop.f32.mrf.mxu3  ;;  %v482_v58 = vmul.f32 %v349_v43, %v349_v43  ;;  %v441_v60 = vadd.f32 %v440_v57, %v349_v43  ;;  %v490_v25 = vmul.f32 %v373_v44, %v373_v44 }
  0xad   : > { %v513_v0 = vadd.f32 %v512_v59, %v482_v58 }
  0xb2   : > { %v352_v45 = vpop.f32.mrf.mxu0  ;;  %v376_v47 = vpop.f32.mrf.mxu1 }
  0xb3   : > { %v874_v50 = vpop.f32.mrf.mxu2  ;;  %v483_v61 = vmul.f32 %v352_v45, %v352_v45  ;;  %v442_v1 = vadd.f32 %v441_v60, %v352_v45  ;;  %v880_v3 = vpop.f32.mrf.mxu3  ;;  %v491_v29 = vmul.f32 %v376_v47, %v376_v47 }
  0xb4   : > { %v498_v59 = vmul.f32 %v874_v50, %v874_v50 }
  0xb5   : > { %v514_v4 = vadd.f32 %v513_v0, %v483_v61 }
  0xba   : > { %v355_v49 = vpop.f32.mrf.mxu0  ;;  %v379_v51 = vpop.f32.mrf.mxu1 }
  0xbb   : > { %v878_v55 = vpop.f32.mrf.mxu2  ;;  %v484_v2 = vmul.f32 %v355_v49, %v355_v49  ;;  %v443_v5 = vadd.f32 %v442_v1, %v355_v49  ;;  %v882_v21 = vpop.f32.mrf.mxu3  ;;  %v492_v32 = vmul.f32 %v379_v51, %v379_v51 }
  0xbd   : > { %v515_v7 = vadd.f32 %v514_v4, %v484_v2 }
  0xc2   : > { %v358_v52 = vpop.f32.mrf.mxu0  ;;  %v382_v63 = vpop.f32.mrf.mxu1 }
  0xc3   : > { %v485_v6 = vmul.f32 %v358_v52, %v358_v52  ;;  %v444_v8 = vadd.f32 %v443_v5, %v358_v52  ;;  %v403_v10 = vpop.f32.mrf.mxu2  ;;  %v493_v37 = vmul.f32 %v382_v63, %v382_v63 }
  0xc4   : > { %v500_v1 = vmul.f32 %v403_v10, %v403_v10 }
  0xc5   : > { %v516_v11 = vadd.f32 %v515_v7, %v485_v6 }
  0xca   : > { %v361_v62 = vpop.f32.mrf.mxu0  ;;  %v385_v17 = vpop.f32.mrf.mxu1 }
  0xcb   : > { %v486_v9 = vmul.f32 %v361_v62, %v361_v62  ;;  %v445_v12 = vadd.f32 %v444_v8, %v361_v62  ;;  %v406_v28 = vpop.f32.mrf.mxu2  ;;  %v494_v45 = vmul.f32 %v385_v17, %v385_v17 }
  0xcd   : > { %v517_v14 = vadd.f32 %v516_v11, %v486_v9 }
  0xd2   : > { %v364_v13 = vpop.f32.mrf.mxu0  ;;  %v388_v35 = vpop.f32.mrf.mxu1 }
  0xd3   : > { %v446_v15 = vadd.f32 %v445_v12, %v364_v13  ;;  %v487_v16 = vmul.f32 %v364_v13, %v364_v13 }
  0xd5   : > { %v447_v19 = vadd.f32 %v446_v15, %v367_v39  ;;  %v518_v20 = vadd.f32 %v517_v14, %v487_v16  ;;  %v427_v39 = vpop.f32.mrf.mxu3  ;;  %v504_v15 = vmul.f32 %v872_v48, %v872_v48 }
  0xd7   : > { %v448_v23 = vadd.f32 %v447_v19, %v370_v41  ;;  %v519_v24 = vadd.f32 %v518_v20, %v488_v18  ;;  %v495_v41 = vmul.f32 %v388_v35, %v388_v35  ;;  %v506_v19 = vmul.f32 %v880_v3, %v880_v3 }
  0xd9   : > { %v449_v26 = vadd.f32 %v448_v23, %v373_v44  ;;  %v520_v27 = vadd.f32 %v519_v24, %v489_v22  ;;  %v409_v44 = vpop.f32.mrf.mxu2  ;;  %v507_v23 = vmul.f32 %v882_v21, %v882_v21 }
  0xda   : > { %v502_v11 = vmul.f32 %v409_v44, %v409_v44 }
  0xdb   : > { %v521_v30 = vadd.f32 %v520_v27, %v490_v25  ;;  %v450_v31 = vadd.f32 %v449_v26, %v376_v47 }
  0xdd   : > { %v451_v33 = vadd.f32 %v450_v31, %v379_v51  ;;  %v522_v34 = vadd.f32 %v521_v30, %v491_v29  ;;  %v497_v51 = vmul.f32 %v870_v46, %v870_v46  ;;  %v430_v62 = vpop.f32.mrf.mxu3 }
  0xde   : > { %v509_v30 = vmul.f32 %v430_v62, %v430_v62 }
  0xdf   : > { %v452_v36 = vadd.f32 %v451_v33, %v382_v63  ;;  %v523_v38 = vadd.f32 %v522_v34, %v492_v32  ;;  %v499_v63 = vmul.f32 %v878_v55, %v878_v55 }
  0xe1   : > { %v524_v40 = vadd.f32 %v523_v38, %v493_v37  ;;  %v453_v43 = vadd.f32 %v452_v36, %v385_v17  ;;  %v412_v5 = vpop.f32.mrf.mxu2 }
  0xe2   : > { %v503_v12 = vmul.f32 %v412_v5, %v412_v5 }
  0xe3   : > { %v525_v49 = vadd.f32 %v524_v40, %v494_v45  ;;  %v454_v52 = vadd.f32 %v453_v43, %v388_v35 }
  0xe5   : > { %v455_v47 = vadd.f32 %v454_v52, %v868_v42  ;;  %v526_v56 = vadd.f32 %v525_v49, %v495_v41  ;;  %v433_v14 = vpop.f32.mrf.mxu3  ;;  %v439_v52 = vld [vmem:[#allocation2] sm:$0x1] }
  0xe6   : > { %v510_v33 = vmul.f32 %v433_v14, %v433_v14 }
  0xe7   : > { %v456_v57 = vadd.f32 %v455_v47, %v870_v46  ;;  %v527_v58 = vadd.f32 %v526_v56, %v496_v54  ;;  %v501_v46 = vmul.f32 %v406_v28, %v406_v28  ;;  %v479_v47 = vld [vmem:[#allocation3] sm:$0x1] }
  0xe9   : > { %v457_v60 = vadd.f32 %v456_v57, %v874_v50  ;;  %v528_v61 = vadd.f32 %v527_v58, %v497_v51 }
  0xeb   : > { %v529_v0 = vadd.f32 %v528_v61, %v498_v59  ;;  %v458_v42 = vadd.f32 %v457_v60, %v878_v55 }
  0xed   : > { %v459_v2 = vadd.f32 %v458_v42, %v403_v10  ;;  %v530_v4 = vadd.f32 %v529_v0, %v499_v63  ;;  %v505_v10 = vmul.f32 %v876_v53, %v876_v53 }
  0xef   : > { %v460_v6 = vadd.f32 %v459_v2, %v406_v28  ;;  %v531_v7 = vadd.f32 %v530_v4, %v500_v1  ;;  %v436_v28 = vpop.f32.mrf.mxu3 }
  0xf0   : > { %v511_v34 = vmul.f32 %v436_v28, %v436_v28 }
  0xf1   : > { %v532_v8 = vadd.f32 %v531_v7, %v501_v46  ;;  %v461_v9 = vadd.f32 %v460_v6, %v409_v44 }
  0xf3   : > { %v533_v50 = vadd.f32 %v532_v8, %v502_v11  ;;  %v462_v13 = vadd.f32 %v461_v9, %v412_v5 }
  0xf5   : > { %v463_v16 = vadd.f32 %v462_v13, %v872_v48  ;;  %v534_v55 = vadd.f32 %v533_v50, %v503_v12  ;;  %v508_v48 = vmul.f32 %v427_v39, %v427_v39 }
  0xf7   : > { %v464_v17 = vadd.f32 %v463_v16, %v876_v53  ;;  %v535_v18 = vadd.f32 %v534_v55, %v504_v15 }
  0xf9   : > { %v465_v20 = vadd.f32 %v464_v17, %v880_v3  ;;  %v536_v22 = vadd.f32 %v535_v18, %v505_v10 }
  0xfb   : > { %v537_v24 = vadd.f32 %v536_v22, %v506_v19  ;;  %v466_v25 = vadd.f32 %v465_v20, %v882_v21 }
  0xfd   : > { %v467_v26 = vadd.f32 %v466_v25, %v427_v39  ;;  %v538_v27 = vadd.f32 %v537_v24, %v507_v23 }
  0xff   : > { %v468_v29 = vadd.f32 %v467_v26, %v430_v62  ;;  %v539_v53 = vadd.f32 %v538_v27, %v508_v48 }
 0x101   : > { %v540_v31 = vadd.f32 %v539_v53, %v509_v30  ;;  %v469_v32 = vadd.f32 %v468_v29, %v433_v14 }
 0x103   : > { %v541_v35 = vadd.f32 %v540_v31, %v510_v33  ;;  %v470_v3 = vadd.f32 %v469_v32, %v436_v28 }
 0x105   : > { %v471_v36 = vrot.slane %v470_v3, 4  ;;  %v542_v37 = vadd.f32 %v541_v35, %v511_v34 }
 0x107   : > { %v472_v38 = vadd.f32 %v471_v36, %v470_v3  ;;  %v543_v40 = vrot.slane %v542_v37, 4 }
 0x109   : > { %v473_v43 = vrot.slane %v472_v38, 2  ;;  %v544_v45 = vadd.f32 %v543_v40, %v542_v37 }
 0x10b   : > { %v474_v21 = vadd.f32 %v473_v43, %v472_v38  ;;  %v545_v41 = vrot.slane %v544_v45, 2 }
 0x10d   : > { %v475_v39 = vrot.slane %v474_v21, 1  ;;  %v546_v49 = vadd.f32 %v545_v41, %v544_v45 }
 0x10f   : > { %v476_v44 = vadd.f32 %v475_v39, %v474_v21  ;;  %v547_v54 = vrot.slane %v546_v49, 1 }
 0x111   : > { %v477_v56 = vadd.f32 %v476_v44, %v439_v52  ;;  %v548_v51 = vadd.f32 %v547_v54, %v546_v49  ;;  %554 = sbr.rel (%p667_p5) target bundleno = 318 (0x13e), region = 44 }
 0x113   : > { %478 = vst [vmem:[#allocation2] sm:$0x1] %v477_v56  ;;  %v549_v57 = vadd.f32 %v548_v51, %v479_v47 }
 0x115   : > { %550 = vst [vmem:[#allocation3] sm:$0x1] %v549_v57 }
 0x116   : > { %v562_v46 = vld [vmem:[%s924_s2] sm:$0x1] }
 0x117   : > { %v575_v11 = vld [vmem:[%s925_s3] sm:$0x1] }
 0x11a   : > { %v555_v58 = vld [vmem:[#allocation2] sm:$0x1] }
 0x11b   : > { %v556_v60 = vmul.f32 0.001953125, %v555_v58 }
 0x11c   : > { %v557_v59 = vld [vmem:[#allocation3] sm:$0x1] }
 0x11d   : > { %v558_v61 = vmul.f32 0.001953125, %v557_v59  ;;  %v559_v62 = vmul.f32 %v556_v60, %v556_v60 }
 0x11f   : > { %v560_v63 = vsub.f32 %v558_v61, %v559_v62 }
 0x121   : > { %v561_v0 = vmax.f32 %v560_v63, 0.0 }
 0x123   : > { %v563_v42 = vadd.f32 1e-05, %v561_v0 }
 0x125   : > { %703 = vrsqrt.f32 %v563_v42  ;;  %vm570_vm1 = vweird.f32 %v563_v42 }
 0x12b   : > { %v704_v1 = vpop.eup %703 }
 0x12c   : > { %v565_v2 = vmul.f32 %v704_v1, %v563_v42  ;;  %vm571_vm2 = vweird.f32 %v704_v1 }
 0x12d   : > { %vm572_vm3 = vmor %vm570_vm1, %vm571_vm2 }
 0x12e   : > { %v566_v4 = vmul.f32 %v704_v1, %v565_v2 }
 0x130   : > { %v567_v5 = vmul.f32 0.5, %v566_v4 }
 0x132   : > { %v568_v6 = vsub.f32 1.5, %v567_v5 }
 0x134   : > { %v569_v7 = vmul.f32 %v704_v1, %v568_v6 }
 0x136   : > { %v573_v8 = vsel %vm572_vm3, %v704_v1, %v569_v7 }
 0x137   : > { %v574_v9 = vmul.f32 %v573_v8, %v562_v46 }
 0x139   : > { %578 = vst [vmem:[#allocation4] sm:$0x1] %v574_v9  ;;  %v576_v12 = vmul.f32 %v574_v9, %v556_v60 }
 0x13b   : > { %v577_v50 = vsub.f32 %v575_v11, %v576_v12 }
 0x13d   : > { %579 = vst [vmem:[#allocation4 + $0x1] sm:$0x1] %v577_v50 }
 0x13e PF: > { %p691_p6 = scmp.eq.s32.totalorder %s778_s16, 1  ;;  %s746_s10 = smov [#allocation4]  }
 0x13f   : > { %s586_s11 = sshll.u32 %s746_s10, 4  ;;  %s588_s14 = sshll.u32 %s926_s4, 4  ;;  %s587_s11 = int_to_ptr.vmem [resolvable:$true] %s586_s11  ;;  %s589_s14 = int_to_ptr.hbm [resolvable:$true] %s588_s14 }
 0x140   : > { %688 = dma.vmem_to_hbm [thread:$0]  (%p691_p6), %s587_s11, 32, %s589_s14, [#allocation5]  }
 0x141   : > { %738 = dma.done.wait (%p691_p6), [#allocation5], 32  }
 0x142   : > { %740 = vsyncadd (%p691_p6), [#allocation5], 4294967264 }
 0x143 PF: > { %s15_s15 = sadd.s32 1, %s743_s15  }
 0x144   : > { %p12_p7 = scmp.ge.s32.totalorder %s15_s15, 4  }
 0x146   :  { %14 = sbr.rel (!%p12_p7) target bundleno = 1 (0x1), region = 71 }
 0x14b   :  { %602 = vsyncpa [#allocation5], 1 }
 0x14c   :  { %604 = vsyncpa [#allocation5 + $0x1], 1 }

</bundles_post_ra>
